<compile_context>
chip_gen: v5e
topology: v5e:2x2
jax: 0.10.0
libtpu: 0.0.40
codegen_flags: <defaults>
</compile_context>

<pallas_src>
import functools
import math

import jax
import jax.numpy as jnp
from jax.experimental import pallas as pl
from jax.experimental.pallas import tpu as pltpu


def _mha_kernel(*refs, n_heads, head_dim, scale, has_mask, compute_dtype, approx_recip):
    if has_mask:
        (xq_ref, xk_ref, xv_ref,
         wq_ref, bq_ref, wk_ref, bk_ref, wv_ref, bv_ref,
         wo_ref, bo_ref, mask_ref,
         o_ref, k_scr, v_scr) = refs
    else:
        (xq_ref, xk_ref, xv_ref,
         wq_ref, bq_ref, wk_ref, bk_ref, wv_ref, bv_ref,
         wo_ref, bo_ref,
         o_ref, k_scr, v_scr) = refs
        mask_ref = None

    qt = pl.program_id(1)

    # Full-width K/V projections, once per batch (first query tile), stashed in VMEM.
    @pl.when(qt == 0)
    def _():
        k = jnp.dot(xk_ref[...].astype(compute_dtype), wk_ref[...],
                    preferred_element_type=jnp.float32) + bk_ref[...]
        v = jnp.dot(xv_ref[...].astype(compute_dtype), wv_ref[...],
                    preferred_element_type=jnp.float32) + bv_ref[...]
        k_scr[...] = k.astype(compute_dtype)
        v_scr[...] = v.astype(compute_dtype)

    # Query-tile projection; fold 1/sqrt(head_dim) into q (scales tq*D elems, not tq*S).
    q = jnp.dot(xq_ref[...].astype(compute_dtype), wq_ref[...],
                preferred_element_type=jnp.float32) + bq_ref[...]
    q = (q * scale).astype(compute_dtype)                    # (tq, D)

    k = k_scr[...]                                           # (S, D) compute dtype
    v = v_scr[...]

    # Hoist mask load + cast out of the (unrolled) head loop: one DMA'd tile, one
    # widening cast, reused by every head (JAX does not CSE these per-iteration).
    mask_add = None
    if mask_ref is not None:
        mask_add = mask_ref[...].astype(jnp.float32)         # (tq, S), 0 / -1e30

    ctx_parts = []
    for h in range(n_heads):                                 # static unroll
        sl = slice(h * head_dim, (h + 1) * head_dim)
        qh = q[:, sl]                                        # (tq, hd)
        kh = k[:, sl]                                        # (S, hd)
        vh = v[:, sl]
        # Contract head_dim of q against head_dim of k directly (no XLU transpose).
        scores = jax.lax.dot_general(
            qh, kh, (((1,), (1,)), ((), ())),
            preferred_element_type=jnp.float32)              # (tq, S)
        if mask_add is not None:
            scores = scores + mask_add                       # additive mask
        m = jnp.max(scores, axis=-1, keepdims=True)
        p = jnp.exp(scores - m)
        denom = jnp.sum(p, axis=-1, keepdims=True)
        p = p * pl.reciprocal(denom, approx=approx_recip)
        ctx_parts.append(jnp.dot(p.astype(compute_dtype), vh,
                                 preferred_element_type=jnp.float32))
    ctx = jnp.concatenate(ctx_parts, axis=-1).astype(compute_dtype)   # (tq, D)

    # Single full-width output projection per query tile + bias; one lane-dense store.
    out = jnp.dot(ctx, wo_ref[...], preferred_element_type=jnp.float32) + bo_ref[...]
    o_ref[...] = out.astype(o_ref.dtype)


def multihead_attention(query, key, value, params, n_heads, mask=None,
                        *, q_tile=256, compute_dtype=jnp.bfloat16):
    """query/key/value: (B, S, D) float32.  mask: optional (B, S, S), nonzero = masked."""
    B, S, D = query.shape
    assert D % n_heads == 0, "d_model must be divisible by n_heads"
    head_dim = D // n_heads
    tq = min(q_tile, S)
    assert S % tq == 0, "seq_len must be divisible by the query tile"
    num_qt = S // tq
    scale = 1.0 / math.sqrt(head_dim)

    cdt = jnp.dtype(compute_dtype)
    approx_recip = cdt != jnp.dtype(jnp.float32)

    # Weights in the matmul compute dtype; biases stay f32 (added to f32 accumulators).
    wq = params["wq"].astype(cdt)
    wk = params["wk"].astype(cdt)
    wv = params["wv"].astype(cdt)
    wo = params["wo"].astype(cdt)
    bq = params["bq"].reshape(1, D).astype(jnp.float32)
    bk = params["bk"].reshape(1, D).astype(jnp.float32)
    bv = params["bv"].reshape(1, D).astype(jnp.float32)
    bo = params["bo"].reshape(1, D).astype(jnp.float32)

    w_spec = pl.BlockSpec((D, D), lambda b, t: (0, 0))
    b_spec = pl.BlockSpec((1, D), lambda b, t: (0, 0))
    in_specs = [
        pl.BlockSpec((None, tq, D), lambda b, t: (b, t, 0)),   # query tile
        pl.BlockSpec((None, S, D), lambda b, t: (b, 0, 0)),    # key   (full seq, per batch)
        pl.BlockSpec((None, S, D), lambda b, t: (b, 0, 0)),    # value (full seq, per batch)
        w_spec, b_spec,   # Wq, bq
        w_spec, b_spec,   # Wk, bk
        w_spec, b_spec,   # Wv, bv
        w_spec, b_spec,   # Wo, bo
    ]
    inputs = [query, key, value, wq, bq, wk, bk, wv, bv, wo, bo]

    has_mask = mask is not None
    if has_mask:
        # Compressed additive mask: 0 keep / -1e30 masked, in bf16 (half the DMA of
        # int32, no select in-kernel, no -inf -> NaN on fully-masked rows).
        add_mask = jnp.where(mask != 0, -1e30, 0.0).astype(jnp.bfloat16)
        inputs.append(add_mask)
        in_specs.append(pl.BlockSpec((None, tq, S), lambda b, t: (b, t, 0)))

    kernel = functools.partial(
        _mha_kernel, n_heads=n_heads, head_dim=head_dim, scale=scale,
        has_mask=has_mask, compute_dtype=cdt, approx_recip=approx_recip)

    return pl.pallas_call(
        kernel,
        out_shape=jax.ShapeDtypeStruct((B, S, D), query.dtype),
        grid_spec=pltpu.PrefetchScalarGridSpec(
            num_scalar_prefetch=0,
            grid=(B, num_qt),
            in_specs=in_specs,
            out_specs=pl.BlockSpec((None, tq, D), lambda b, t: (b, t, 0)),
            scratch_shapes=[pltpu.VMEM((S, D), cdt),    # projected K (resident per batch)
                            pltpu.VMEM((S, D), cdt)],   # projected V (resident per batch)
        ),
        compiler_params=pltpu.CompilerParams(
            # Batch axis is megacore-parallel; the query-tile axis carries the K/V
            # scratch state so it must stay "arbitrary".
            dimension_semantics=("parallel", "arbitrary"),
            # K/V are whole-sequence-resident in scratch; raise the scoped-VMEM cap.
            # (Raise further, ~100 MiB, on v5e/v6e for very long sequences; keep
            # headroom on v7x where physical VMEM is 64 MiB.)
            vmem_limit_bytes=64 * 1024 * 1024,
        ),
    )(*inputs)


def _reference_mha(query, key, value, params, n_heads, mask=None):
    """Pure-JAX reference mirroring the PyTorch module's forward."""
    B, S, D = query.shape
    hd = D // n_heads
    q = query @ params["wq"] + params["bq"]
    k = key @ params["wk"] + params["bk"]
    v = value @ params["wv"] + params["bv"]
    q = q.reshape(B, S, n_heads, hd).transpose(0, 2, 1, 3)
    k = k.reshape(B, S, n_heads, hd).transpose(0, 2, 1, 3)
    v = v.reshape(B, S, n_heads, hd).transpose(0, 2, 1, 3)
    scores = jnp.einsum("bhqd,bhkd->bhqk", q, k) / (hd ** 0.5)
    if mask is not None:
        scores = jnp.where(mask[:, None, :, :] != 0, -jnp.inf, scores)
    p = jax.nn.softmax(scores, axis=-1)
    attn = jnp.einsum("bhqk,bhkd->bhqd", p, v)
    attn = attn.transpose(0, 2, 1, 3).reshape(B, S, D)
    return attn @ params["wo"] + params["bo"]


def _init_params(key, d_model):
    keys = jax.random.split(key, 8)
    scale = 1.0 / math.sqrt(d_model)
    def w(k):
        return jax.random.uniform(k, (d_model, d_model), jnp.float32, -scale, scale)
    def b(k):
        return jax.random.uniform(k, (d_model,), jnp.float32, -scale, scale)
    return {
        "wq": w(keys[0]), "bq": b(keys[1]),
        "wk": w(keys[2]), "bk": b(keys[3]),
        "wv": w(keys[4]), "bv": b(keys[5]),
        "wo": w(keys[6]), "bo": b(keys[7]),
    }


if __name__ == "__main__":
    B, S, D, H = 2, 8, 32, 4

    root = jax.random.PRNGKey(0)
    k_params, k_q, k_k, k_v = jax.random.split(root, 4)
    params = _init_params(k_params, D)

    query = jax.random.normal(k_q, (B, S, D), jnp.float32)
    key = jax.random.normal(k_k, (B, S, D), jnp.float32)
    value = jax.random.normal(k_v, (B, S, D), jnp.float32)

    # Causal-style mask: nonzero entries are masked out (torch.masked_fill semantics).
    mask = jnp.triu(jnp.ones((S, S), jnp.int32), k=1)[None, :, :].repeat(B, axis=0)

    ref = _reference_mha(query, key, value, params, H, mask=mask)

    # Default perf path: bf16 matmul operands, f32 MXU accumulation.
    out = jax.block_until_ready(
        multihead_attention(query, key, value, params, H, mask=mask))
    assert out.shape == (B, S, D)
    assert jnp.allclose(out, ref, atol=5e-2, rtol=5e-2), "bf16 path mismatch vs reference"

    # Strict f32 compute path (exact reciprocal) for a tight correctness check.
    out_f32 = jax.block_until_ready(
        multihead_attention(query, key, value, params, H, mask=mask,
                            compute_dtype=jnp.float32))
    assert jnp.allclose(out_f32, ref, atol=1e-4, rtol=1e-4), "f32 path mismatch vs reference"

    # mask=None path: compiles a variant with no mask input (no dead DMA).
    out_nm = jax.block_until_ready(
        multihead_attention(query, key, value, params, H, mask=None))
    ref_nm = _reference_mha(query, key, value, params, H, mask=None)
    assert jnp.allclose(out_nm, ref_nm, atol=5e-2, rtol=5e-2), "no-mask path mismatch"

    print("KERNEL_OK")
</pallas_src>

<mosaic_0001>
module attributes {stable_mosaic.version = 11 : i64} {
  func.func @_mha_kernel(%arg0: i32, %arg1: i32, %arg2: memref<1x8x32xf32, #tpu.memory_space<vmem>>, %arg3: memref<1x8x32xf32, #tpu.memory_space<vmem>>, %arg4: memref<1x8x32xf32, #tpu.memory_space<vmem>>, %arg5: memref<32x32xbf16, #tpu.memory_space<vmem>>, %arg6: memref<1x32xf32, #tpu.memory_space<vmem>>, %arg7: memref<32x32xbf16, #tpu.memory_space<vmem>>, %arg8: memref<1x32xf32, #tpu.memory_space<vmem>>, %arg9: memref<32x32xbf16, #tpu.memory_space<vmem>>, %arg10: memref<1x32xf32, #tpu.memory_space<vmem>>, %arg11: memref<32x32xbf16, #tpu.memory_space<vmem>>, %arg12: memref<1x32xf32, #tpu.memory_space<vmem>>, %arg13: memref<1x8x8xbf16, #tpu.memory_space<vmem>>, %arg14: memref<1x8x32xf32, #tpu.memory_space<vmem>>, %arg15: memref<8x32xbf16, #tpu.memory_space<vmem>>, %arg16: memref<8x32xbf16, #tpu.memory_space<vmem>>) attributes {dimension_semantics = [#tpu.dimension_semantics<parallel>, #tpu.dimension_semantics<arbitrary>], iteration_bounds = array<i64: 2, 1>, scalar_prefetch = 0 : i64, scratch_operands = 2 : i64, tpu.core_type = #tpu.core_type<tc>, window_params = [{transform_indices = @transform_0, window_bounds = array<i64: 1, 8, 32>}, {transform_indices = @transform_1, window_bounds = array<i64: 1, 8, 32>}, {transform_indices = @transform_2, window_bounds = array<i64: 1, 8, 32>}, {pipeline_mode = #tpu.pipeline_mode<synchronous>, transform_indices = @transform_3, window_bounds = array<i64: 32, 32>}, {pipeline_mode = #tpu.pipeline_mode<synchronous>, transform_indices = @transform_4, window_bounds = array<i64: 1, 32>}, {pipeline_mode = #tpu.pipeline_mode<synchronous>, transform_indices = @transform_5, window_bounds = array<i64: 32, 32>}, {pipeline_mode = #tpu.pipeline_mode<synchronous>, transform_indices = @transform_6, window_bounds = array<i64: 1, 32>}, {pipeline_mode = #tpu.pipeline_mode<synchronous>, transform_indices = @transform_7, window_bounds = array<i64: 32, 32>}, {pipeline_mode = #tpu.pipeline_mode<synchronous>, transform_indices = @transform_8, window_bounds = array<i64: 1, 32>}, {pipeline_mode = #tpu.pipeline_mode<synchronous>, transform_indices = @transform_9, window_bounds = array<i64: 32, 32>}, {pipeline_mode = #tpu.pipeline_mode<synchronous>, transform_indices = @transform_10, window_bounds = array<i64: 1, 32>}, {transform_indices = @transform_11, window_bounds = array<i64: 1, 8, 8>}, {transform_indices = @transform_12, window_bounds = array<i64: 1, 8, 32>}]} {
    %c0_i32 = arith.constant 0 : i32
    %0 = arith.cmpi eq, %arg1, %c0_i32 : i32
    %1 = arith.extui %0 : i1 to i32
    %c0_i32_0 = arith.constant 0 : i32
    %2 = arith.cmpi ne, %1, %c0_i32_0 : i32
    scf.if %2 {
      %c0_39 = arith.constant 0 : index
      %c0_40 = arith.constant 0 : index
      %c0_41 = arith.constant 0 : index
      %97 = vector.load %arg3[%c0_39, %c0_40, %c0_41] : memref<1x8x32xf32, #tpu.memory_space<vmem>>, vector<1x8x32xf32>
      %98 = vector.shape_cast %97 : vector<1x8x32xf32> to vector<8x32xf32>
      %99 = arith.truncf %98 : vector<8x32xf32> to vector<8x32xbf16>
      %c0_42 = arith.constant 0 : index
      %c0_43 = arith.constant 0 : index
      %100 = vector.load %arg7[%c0_42, %c0_43] : memref<32x32xbf16, #tpu.memory_space<vmem>>, vector<32x32xbf16>
      %cst_44 = arith.constant dense<0.000000e+00> : vector<8x32xf32>
      %101 = tpu.matmul %99, %100, %cst_44 {dimension_numbers = #tpu.dot_dimension_numbers<[1], [0], [0], [1], [0, 0, 1, 1], [], []>} : vector<8x32xbf16>, vector<32x32xbf16>, vector<8x32xf32> -> vector<8x32xf32>
      %c0_45 = arith.constant 0 : index
      %c0_46 = arith.constant 0 : index
      %102 = vector.load %arg8[%c0_45, %c0_46] : memref<1x32xf32, #tpu.memory_space<vmem>>, vector<1x32xf32>
      %103 = vector.broadcast %102 : vector<1x32xf32> to vector<8x32xf32>
      %104 = arith.addf %101, %103 : vector<8x32xf32>
      %c0_47 = arith.constant 0 : index
      %c0_48 = arith.constant 0 : index
      %c0_49 = arith.constant 0 : index
      %105 = vector.load %arg4[%c0_47, %c0_48, %c0_49] : memref<1x8x32xf32, #tpu.memory_space<vmem>>, vector<1x8x32xf32>
      %106 = vector.shape_cast %105 : vector<1x8x32xf32> to vector<8x32xf32>
      %107 = arith.truncf %106 : vector<8x32xf32> to vector<8x32xbf16>
      %c0_50 = arith.constant 0 : index
      %c0_51 = arith.constant 0 : index
      %108 = vector.load %arg9[%c0_50, %c0_51] : memref<32x32xbf16, #tpu.memory_space<vmem>>, vector<32x32xbf16>
      %cst_52 = arith.constant dense<0.000000e+00> : vector<8x32xf32>
      %109 = tpu.matmul %107, %108, %cst_52 {dimension_numbers = #tpu.dot_dimension_numbers<[1], [0], [0], [1], [0, 0, 1, 1], [], []>} : vector<8x32xbf16>, vector<32x32xbf16>, vector<8x32xf32> -> vector<8x32xf32>
      %c0_53 = arith.constant 0 : index
      %c0_54 = arith.constant 0 : index
      %110 = vector.load %arg10[%c0_53, %c0_54] : memref<1x32xf32, #tpu.memory_space<vmem>>, vector<1x32xf32>
      %111 = vector.broadcast %110 : vector<1x32xf32> to vector<8x32xf32>
      %112 = arith.addf %109, %111 : vector<8x32xf32>
      %113 = arith.truncf %104 : vector<8x32xf32> to vector<8x32xbf16>
      %c0_55 = arith.constant 0 : index
      %c0_56 = arith.constant 0 : index
      %114 = vector.load %arg15[%c0_55, %c0_56] : memref<8x32xbf16, #tpu.memory_space<vmem>>, vector<8x32xbf16>
      tpu.vector_store %arg15[%c0_55, %c0_56], %113 {strides = array<i32>} : memref<8x32xbf16, #tpu.memory_space<vmem>>, vector<8x32xbf16>,
      %115 = arith.truncf %112 : vector<8x32xf32> to vector<8x32xbf16>
      %c0_57 = arith.constant 0 : index
      %c0_58 = arith.constant 0 : index
      %116 = vector.load %arg16[%c0_57, %c0_58] : memref<8x32xbf16, #tpu.memory_space<vmem>>, vector<8x32xbf16>
      tpu.vector_store %arg16[%c0_57, %c0_58], %115 {strides = array<i32>} : memref<8x32xbf16, #tpu.memory_space<vmem>>, vector<8x32xbf16>,
    } else {
    }
    %c0 = arith.constant 0 : index
    %c0_1 = arith.constant 0 : index
    %c0_2 = arith.constant 0 : index
    %3 = vector.load %arg2[%c0, %c0_1, %c0_2] : memref<1x8x32xf32, #tpu.memory_space<vmem>>, vector<1x8x32xf32>
    %4 = vector.shape_cast %3 : vector<1x8x32xf32> to vector<8x32xf32>
    %5 = arith.truncf %4 : vector<8x32xf32> to vector<8x32xbf16>
    %c0_3 = arith.constant 0 : index
    %c0_4 = arith.constant 0 : index
    %6 = vector.load %arg5[%c0_3, %c0_4] : memref<32x32xbf16, #tpu.memory_space<vmem>>, vector<32x32xbf16>
    %cst = arith.constant dense<0.000000e+00> : vector<8x32xf32>
    %7 = tpu.matmul %5, %6, %cst {dimension_numbers = #tpu.dot_dimension_numbers<[1], [0], [0], [1], [0, 0, 1, 1], [], []>} : vector<8x32xbf16>, vector<32x32xbf16>, vector<8x32xf32> -> vector<8x32xf32>
    %c0_5 = arith.constant 0 : index
    %c0_6 = arith.constant 0 : index
    %8 = vector.load %arg6[%c0_5, %c0_6] : memref<1x32xf32, #tpu.memory_space<vmem>>, vector<1x32xf32>
    %9 = vector.broadcast %8 : vector<1x32xf32> to vector<8x32xf32>
    %10 = arith.addf %7, %9 : vector<8x32xf32>
    %cst_7 = arith.constant 0.353553385 : f32
    %11 = vector.broadcast %cst_7 : f32 to vector<8x32xf32>
    %12 = arith.mulf %10, %11 : vector<8x32xf32>
    %13 = arith.truncf %12 : vector<8x32xf32> to vector<8x32xbf16>
    %c0_8 = arith.constant 0 : index
    %c0_9 = arith.constant 0 : index
    %14 = vector.load %arg15[%c0_8, %c0_9] : memref<8x32xbf16, #tpu.memory_space<vmem>>, vector<8x32xbf16>
    %c0_10 = arith.constant 0 : index
    %c0_11 = arith.constant 0 : index
    %15 = vector.load %arg16[%c0_10, %c0_11] : memref<8x32xbf16, #tpu.memory_space<vmem>>, vector<8x32xbf16>
    %c0_12 = arith.constant 0 : index
    %c0_13 = arith.constant 0 : index
    %c0_14 = arith.constant 0 : index
    %16 = vector.load %arg13[%c0_12, %c0_13, %c0_14] : memref<1x8x8xbf16, #tpu.memory_space<vmem>>, vector<1x8x8xbf16>
    %17 = vector.shape_cast %16 : vector<1x8x8xbf16> to vector<8x8xbf16>
    %18 = arith.extf %17 : vector<8x8xbf16> to vector<8x8xf32>
    %19 = vector.extract_strided_slice %13 {offsets = [0, 0], sizes = [8, 8], strides = [1, 1]} : vector<8x32xbf16> to vector<8x8xbf16>
    %20 = vector.extract_strided_slice %14 {offsets = [0, 0], sizes = [8, 8], strides = [1, 1]} : vector<8x32xbf16> to vector<8x8xbf16>
    %21 = vector.extract_strided_slice %15 {offsets = [0, 0], sizes = [8, 8], strides = [1, 1]} : vector<8x32xbf16> to vector<8x8xbf16>
    %cst_15 = arith.constant dense<0.000000e+00> : vector<8x8xf32>
    %22 = tpu.matmul %19, %20, %cst_15 {dimension_numbers = #tpu.dot_dimension_numbers<[1], [1], [0], [0], [0, 0, 1, 0], [], []>} : vector<8x8xbf16>, vector<8x8xbf16>, vector<8x8xf32> -> vector<8x8xf32>
    %23 = arith.addf %22, %18 : vector<8x8xf32>
    %cst_16 = arith.constant dense<0xFF800000> : vector<8xf32>
    %24 = vector.multi_reduction <maximumf>, %23, %cst_16 [1] : vector<8x8xf32> to vector<8xf32>
    %25 = vector.shape_cast %24 : vector<8xf32> to vector<8x1xf32>
    %26 = vector.broadcast %25 : vector<8x1xf32> to vector<8x8xf32>
    %27 = arith.subf %23, %26 : vector<8x8xf32>
    %28 = math.exp %27 : vector<8x8xf32>
    %cst_17 = arith.constant dense<0.000000e+00> : vector<8xf32>
    %29 = vector.multi_reduction <add>, %28, %cst_17 [1] : vector<8x8xf32> to vector<8xf32>
    %30 = vector.shape_cast %29 : vector<8xf32> to vector<8x1xf32>
    %31 = tpu.reciprocal %30 {approx = true} : vector<8x1xf32> -> vector<8x1xf32>
    %32 = vector.broadcast %31 : vector<8x1xf32> to vector<8x8xf32>
    %33 = arith.mulf %28, %32 : vector<8x8xf32>
    %34 = arith.truncf %33 : vector<8x8xf32> to vector<8x8xbf16>
    %cst_18 = arith.constant dense<0.000000e+00> : vector<8x8xf32>
    %35 = tpu.matmul %34, %21, %cst_18 {dimension_numbers = #tpu.dot_dimension_numbers<[1], [0], [0], [1], [0, 0, 1, 1], [], []>} : vector<8x8xbf16>, vector<8x8xbf16>, vector<8x8xf32> -> vector<8x8xf32>
    %36 = vector.extract_strided_slice %13 {offsets = [0, 8], sizes = [8, 8], strides = [1, 1]} : vector<8x32xbf16> to vector<8x8xbf16>
    %37 = vector.extract_strided_slice %14 {offsets = [0, 8], sizes = [8, 8], strides = [1, 1]} : vector<8x32xbf16> to vector<8x8xbf16>
    %38 = vector.extract_strided_slice %15 {offsets = [0, 8], sizes = [8, 8], strides = [1, 1]} : vector<8x32xbf16> to vector<8x8xbf16>
    %cst_19 = arith.constant dense<0.000000e+00> : vector<8x8xf32>
    %39 = tpu.matmul %36, %37, %cst_19 {dimension_numbers = #tpu.dot_dimension_numbers<[1], [1], [0], [0], [0, 0, 1, 0], [], []>} : vector<8x8xbf16>, vector<8x8xbf16>, vector<8x8xf32> -> vector<8x8xf32>
    %40 = arith.addf %39, %18 : vector<8x8xf32>
    %cst_20 = arith.constant dense<0xFF800000> : vector<8xf32>
    %41 = vector.multi_reduction <maximumf>, %40, %cst_20 [1] : vector<8x8xf32> to vector<8xf32>
    %42 = vector.shape_cast %41 : vector<8xf32> to vector<8x1xf32>
    %43 = vector.broadcast %42 : vector<8x1xf32> to vector<8x8xf32>
    %44 = arith.subf %40, %43 : vector<8x8xf32>
    %45 = math.exp %44 : vector<8x8xf32>
    %cst_21 = arith.constant dense<0.000000e+00> : vector<8xf32>
    %46 = vector.multi_reduction <add>, %45, %cst_21 [1] : vector<8x8xf32> to vector<8xf32>
    %47 = vector.shape_cast %46 : vector<8xf32> to vector<8x1xf32>
    %48 = tpu.reciprocal %47 {approx = true} : vector<8x1xf32> -> vector<8x1xf32>
    %49 = vector.broadcast %48 : vector<8x1xf32> to vector<8x8xf32>
    %50 = arith.mulf %45, %49 : vector<8x8xf32>
    %51 = arith.truncf %50 : vector<8x8xf32> to vector<8x8xbf16>
    %cst_22 = arith.constant dense<0.000000e+00> : vector<8x8xf32>
    %52 = tpu.matmul %51, %38, %cst_22 {dimension_numbers = #tpu.dot_dimension_numbers<[1], [0], [0], [1], [0, 0, 1, 1], [], []>} : vector<8x8xbf16>, vector<8x8xbf16>, vector<8x8xf32> -> vector<8x8xf32>
    %53 = vector.extract_strided_slice %13 {offsets = [0, 16], sizes = [8, 8], strides = [1, 1]} : vector<8x32xbf16> to vector<8x8xbf16>
    %54 = vector.extract_strided_slice %14 {offsets = [0, 16], sizes = [8, 8], strides = [1, 1]} : vector<8x32xbf16> to vector<8x8xbf16>
    %55 = vector.extract_strided_slice %15 {offsets = [0, 16], sizes = [8, 8], strides = [1, 1]} : vector<8x32xbf16> to vector<8x8xbf16>
    %cst_23 = arith.constant dense<0.000000e+00> : vector<8x8xf32>
    %56 = tpu.matmul %53, %54, %cst_23 {dimension_numbers = #tpu.dot_dimension_numbers<[1], [1], [0], [0], [0, 0, 1, 0], [], []>} : vector<8x8xbf16>, vector<8x8xbf16>, vector<8x8xf32> -> vector<8x8xf32>
    %57 = arith.addf %56, %18 : vector<8x8xf32>
    %cst_24 = arith.constant dense<0xFF800000> : vector<8xf32>
    %58 = vector.multi_reduction <maximumf>, %57, %cst_24 [1] : vector<8x8xf32> to vector<8xf32>
    %59 = vector.shape_cast %58 : vector<8xf32> to vector<8x1xf32>
    %60 = vector.broadcast %59 : vector<8x1xf32> to vector<8x8xf32>
    %61 = arith.subf %57, %60 : vector<8x8xf32>
    %62 = math.exp %61 : vector<8x8xf32>
    %cst_25 = arith.constant dense<0.000000e+00> : vector<8xf32>
    %63 = vector.multi_reduction <add>, %62, %cst_25 [1] : vector<8x8xf32> to vector<8xf32>
    %64 = vector.shape_cast %63 : vector<8xf32> to vector<8x1xf32>
    %65 = tpu.reciprocal %64 {approx = true} : vector<8x1xf32> -> vector<8x1xf32>
    %66 = vector.broadcast %65 : vector<8x1xf32> to vector<8x8xf32>
    %67 = arith.mulf %62, %66 : vector<8x8xf32>
    %68 = arith.truncf %67 : vector<8x8xf32> to vector<8x8xbf16>
    %cst_26 = arith.constant dense<0.000000e+00> : vector<8x8xf32>
    %69 = tpu.matmul %68, %55, %cst_26 {dimension_numbers = #tpu.dot_dimension_numbers<[1], [0], [0], [1], [0, 0, 1, 1], [], []>} : vector<8x8xbf16>, vector<8x8xbf16>, vector<8x8xf32> -> vector<8x8xf32>
    %70 = vector.extract_strided_slice %13 {offsets = [0, 24], sizes = [8, 8], strides = [1, 1]} : vector<8x32xbf16> to vector<8x8xbf16>
    %71 = vector.extract_strided_slice %14 {offsets = [0, 24], sizes = [8, 8], strides = [1, 1]} : vector<8x32xbf16> to vector<8x8xbf16>
    %72 = vector.extract_strided_slice %15 {offsets = [0, 24], sizes = [8, 8], strides = [1, 1]} : vector<8x32xbf16> to vector<8x8xbf16>
    %cst_27 = arith.constant dense<0.000000e+00> : vector<8x8xf32>
    %73 = tpu.matmul %70, %71, %cst_27 {dimension_numbers = #tpu.dot_dimension_numbers<[1], [1], [0], [0], [0, 0, 1, 0], [], []>} : vector<8x8xbf16>, vector<8x8xbf16>, vector<8x8xf32> -> vector<8x8xf32>
    %74 = arith.addf %73, %18 : vector<8x8xf32>
    %cst_28 = arith.constant dense<0xFF800000> : vector<8xf32>
    %75 = vector.multi_reduction <maximumf>, %74, %cst_28 [1] : vector<8x8xf32> to vector<8xf32>
    %76 = vector.shape_cast %75 : vector<8xf32> to vector<8x1xf32>
    %77 = vector.broadcast %76 : vector<8x1xf32> to vector<8x8xf32>
    %78 = arith.subf %74, %77 : vector<8x8xf32>
    %79 = math.exp %78 : vector<8x8xf32>
    %cst_29 = arith.constant dense<0.000000e+00> : vector<8xf32>
    %80 = vector.multi_reduction <add>, %79, %cst_29 [1] : vector<8x8xf32> to vector<8xf32>
    %81 = vector.shape_cast %80 : vector<8xf32> to vector<8x1xf32>
    %82 = tpu.reciprocal %81 {approx = true} : vector<8x1xf32> -> vector<8x1xf32>
    %83 = vector.broadcast %82 : vector<8x1xf32> to vector<8x8xf32>
    %84 = arith.mulf %79, %83 : vector<8x8xf32>
    %85 = arith.truncf %84 : vector<8x8xf32> to vector<8x8xbf16>
    %cst_30 = arith.constant dense<0.000000e+00> : vector<8x8xf32>
    %86 = tpu.matmul %85, %72, %cst_30 {dimension_numbers = #tpu.dot_dimension_numbers<[1], [0], [0], [1], [0, 0, 1, 1], [], []>} : vector<8x8xbf16>, vector<8x8xbf16>, vector<8x8xf32> -> vector<8x8xf32>
    %87 = tpu.concatenate %35, %52, %69, %86 in 1 : vector<8x8xf32>, vector<8x8xf32>, vector<8x8xf32>, vector<8x8xf32> -> vector<8x32xf32>
    %88 = arith.truncf %87 : vector<8x32xf32> to vector<8x32xbf16>
    %c0_31 = arith.constant 0 : index
    %c0_32 = arith.constant 0 : index
    %89 = vector.load %arg11[%c0_31, %c0_32] : memref<32x32xbf16, #tpu.memory_space<vmem>>, vector<32x32xbf16>
    %cst_33 = arith.constant dense<0.000000e+00> : vector<8x32xf32>
    %90 = tpu.matmul %88, %89, %cst_33 {dimension_numbers = #tpu.dot_dimension_numbers<[1], [0], [0], [1], [0, 0, 1, 1], [], []>} : vector<8x32xbf16>, vector<32x32xbf16>, vector<8x32xf32> -> vector<8x32xf32>
    %c0_34 = arith.constant 0 : index
    %c0_35 = arith.constant 0 : index
    %91 = vector.load %arg12[%c0_34, %c0_35] : memref<1x32xf32, #tpu.memory_space<vmem>>, vector<1x32xf32>
    %92 = vector.broadcast %91 : vector<1x32xf32> to vector<8x32xf32>
    %93 = arith.addf %90, %92 : vector<8x32xf32>
    %c0_36 = arith.constant 0 : index
    %c0_37 = arith.constant 0 : index
    %c0_38 = arith.constant 0 : index
    %94 = vector.load %arg14[%c0_36, %c0_37, %c0_38] : memref<1x8x32xf32, #tpu.memory_space<vmem>>, vector<1x8x32xf32>
    %95 = vector.shape_cast %94 : vector<1x8x32xf32> to vector<8x32xf32>
    %96 = vector.shape_cast %93 : vector<8x32xf32> to vector<1x8x32xf32>
    tpu.vector_store %arg14[%c0_36, %c0_37, %c0_38], %96 {strides = array<i32>} : memref<1x8x32xf32, #tpu.memory_space<vmem>>, vector<1x8x32xf32>,
    return
  }
  func.func @transform_0(%arg0: i32, %arg1: i32) -> (i32, i32, i32) {
    %c0_i32 = arith.constant 0 : i32
    %c0_i32_0 = arith.constant 0 : i32
    return %arg0, %arg1, %c0_i32 : i32, i32, i32
  }
  func.func @transform_1(%arg0: i32, %arg1: i32) -> (i32, i32, i32) {
    %c0_i32 = arith.constant 0 : i32
    %c0_i32_0 = arith.constant 0 : i32
    %c0_i32_1 = arith.constant 0 : i32
    return %arg0, %c0_i32, %c0_i32_0 : i32, i32, i32
  }
  func.func @transform_2(%arg0: i32, %arg1: i32) -> (i32, i32, i32) {
    %c0_i32 = arith.constant 0 : i32
    %c0_i32_0 = arith.constant 0 : i32
    %c0_i32_1 = arith.constant 0 : i32
    return %arg0, %c0_i32, %c0_i32_0 : i32, i32, i32
  }
  func.func @transform_3(%arg0: i32, %arg1: i32) -> (i32, i32) {
    %c0_i32 = arith.constant 0 : i32
    %c0_i32_0 = arith.constant 0 : i32
    %c0_i32_1 = arith.constant 0 : i32
    return %c0_i32, %c0_i32_0 : i32, i32
  }
  func.func @transform_4(%arg0: i32, %arg1: i32) -> (i32, i32) {
    %c0_i32 = arith.constant 0 : i32
    %c0_i32_0 = arith.constant 0 : i32
    %c0_i32_1 = arith.constant 0 : i32
    return %c0_i32, %c0_i32_0 : i32, i32
  }
  func.func @transform_5(%arg0: i32, %arg1: i32) -> (i32, i32) {
    %c0_i32 = arith.constant 0 : i32
    %c0_i32_0 = arith.constant 0 : i32
    %c0_i32_1 = arith.constant 0 : i32
    return %c0_i32, %c0_i32_0 : i32, i32
  }
  func.func @transform_6(%arg0: i32, %arg1: i32) -> (i32, i32) {
    %c0_i32 = arith.constant 0 : i32
    %c0_i32_0 = arith.constant 0 : i32
    %c0_i32_1 = arith.constant 0 : i32
    return %c0_i32, %c0_i32_0 : i32, i32
  }
  func.func @transform_7(%arg0: i32, %arg1: i32) -> (i32, i32) {
    %c0_i32 = arith.constant 0 : i32
    %c0_i32_0 = arith.constant 0 : i32
    %c0_i32_1 = arith.constant 0 : i32
    return %c0_i32, %c0_i32_0 : i32, i32
  }
  func.func @transform_8(%arg0: i32, %arg1: i32) -> (i32, i32) {
    %c0_i32 = arith.constant 0 : i32
    %c0_i32_0 = arith.constant 0 : i32
    %c0_i32_1 = arith.constant 0 : i32
    return %c0_i32, %c0_i32_0 : i32, i32
  }
  func.func @transform_9(%arg0: i32, %arg1: i32) -> (i32, i32) {
    %c0_i32 = arith.constant 0 : i32
    %c0_i32_0 = arith.constant 0 : i32
    %c0_i32_1 = arith.constant 0 : i32
    return %c0_i32, %c0_i32_0 : i32, i32
  }
  func.func @transform_10(%arg0: i32, %arg1: i32) -> (i32, i32) {
    %c0_i32 = arith.constant 0 : i32
    %c0_i32_0 = arith.constant 0 : i32
    %c0_i32_1 = arith.constant 0 : i32
    return %c0_i32, %c0_i32_0 : i32, i32
  }
  func.func @transform_11(%arg0: i32, %arg1: i32) -> (i32, i32, i32) {
    %c0_i32 = arith.constant 0 : i32
    %c0_i32_0 = arith.constant 0 : i32
    return %arg0, %arg1, %c0_i32 : i32, i32, i32
  }
  func.func @transform_12(%arg0: i32, %arg1: i32) -> (i32, i32, i32) {
    %c0_i32 = arith.constant 0 : i32
    %c0_i32_0 = arith.constant 0 : i32
    return %arg0, %arg1, %c0_i32 : i32, i32, i32
  }
}

</mosaic_0001>

<bundles_post_ra>
// kernel: tpu_custom_call.1
= control target key start
LH: loop header
LB: loop body
LE: loop exit
PB: predicated region body
PF: predicated region fallthrough
CT: control target
= control target key end

     0   :  { %s2262_s0 = inlined_call_operand.hbm [shape: f32[2,8,32], index: 0, kind: input, shape index: {}]   ;;  %s2263_s1 = inlined_call_operand.hbm [shape: f32[2,8,32], index: 1, kind: input, shape index: {}]   ;;  %s2264_s2 = inlined_call_operand.hbm [shape: f32[2,8,32], index: 2, kind: input, shape index: {}]   ;;  %s2265_s3 = inlined_call_operand.hbm [shape: bf16[32,32], index: 3, kind: input, shape index: {}]   ;;  %s2266_s4 = inlined_call_operand.vmem [shape: f32[1,32], index: 4, kind: input, shape index: {}]   ;;  %s2267_s5 = inlined_call_operand.hbm [shape: bf16[32,32], index: 5, kind: input, shape index: {}]   ;;  %s2268_s6 = inlined_call_operand.vmem [shape: f32[1,32], index: 6, kind: input, shape index: {}]   ;;  %s2269_s7 = inlined_call_operand.hbm [shape: bf16[32,32], index: 7, kind: input, shape index: {}]   ;;  %s2270_s8 = inlined_call_operand.hbm [shape: f32[1,32], index: 8, kind: input, shape index: {}]   ;;  %s2271_s9 = inlined_call_operand.hbm [shape: bf16[32,32], index: 9, kind: input, shape index: {}]   ;;  %s2272_s10 = inlined_call_operand.hbm [shape: f32[1,32], index: 10, kind: input, shape index: {}]   ;;  %s2273_s11 = inlined_call_operand.vmem [shape: bf16[2,8,8], index: 11, kind: input, shape index: {}]   ;;  %s2274_s12 = inlined_call_operand.hbm [shape: f32[2,8,32], index: 12, kind: output, shape index: {}]  }
   0x1   :  { %2287 = sst [smem:[#allocation33_spill]] %s2263_s1 }
   0x2   :  { %2288 = sst [smem:[#allocation34_spill]] %s2265_s3 }
   0x3   :  { %2289 = sst [smem:[#allocation35_spill]] %s2267_s5 }
   0x4   :  { %2290 = sst [smem:[#allocation36_spill]] %s2269_s7 }
   0x5   :  { %2291 = sst [smem:[#allocation37_spill]] %s2270_s8 }
   0x6   :  { %2292 = sst [smem:[#allocation38_spill]] %s2271_s9 }
   0x7   :  { %2293 = sst [smem:[#allocation39_spill]] %s2274_s12 }
   0x8   :  { %17 = vsyncpa [#allocation5], 0 }
   0x9   :  { %19 = vsyncpa [#allocation5 + $0x1], 0 }
   0xa   :  { %20 = vsyncpa [#allocation8], 0 }
   0xb   :  { %22 = vsyncpa [#allocation8 + $0x1], 0 }
   0xc   :  { %23 = vsyncpa [#allocation11], 0 }
   0xd   :  { %24 = vsyncpa [#allocation14], 0 }
   0xe   :  { %25 = vsyncpa [#allocation17], 0 }
   0xf   :  { %26 = vsyncpa [#allocation6], 0 }
  0x10   :  { %28 = vsyncpa [#allocation6 + $0x1], 0  ;;  %s1968_s21 = smov 0   ;;  %s1970_s22 = smov 0  }
  0x11   :  { %s1972_s23 = smov 0   ;;  %s1974_s24 = smov 0  }
  0x12   :  { %s1976_s25 = smov 0   ;;  %s1978_s26 = smov 0  }
  0x13 LB: > { %2294 = sst [smem:[#allocation26_spill]] %s1867_s21  ;;  %s1999_s27 = sadd.s32 4294967295, %s1887_s26   ;;  %s1887_s26 = sphi %s1978_s26, %s34_s26   ;;  %s1883_s25 = sphi %s1976_s25, %s2325_s25   ;;  %s1879_s24 = sphi %s1974_s24, %s2324_s24   ;;  %s1875_s23 = sphi %s1972_s23, %s2328_s23   ;;  %s1871_s22 = sphi %s1970_s22, %s2327_s22   ;;  %s1867_s21 = sphi %s1968_s21, %s2326_s21  }
  0x14   : > { %2295 = sst [smem:[#allocation27_spill]] %s1883_s25  ;;  %p1276_p0 = scmp.ge.s32.totalorder %s1887_s26, 1 }
  0x15   : > { %2296 = sst [smem:[#allocation28_spill]] %s1887_s26  ;;  %p69_p1 = scmp.eq.s32.totalorder %s1999_s27, 0 }
  0x16   : > { %p355_p2 = scmp.lt.s32.totalorder %s1887_s26, 3  ;;  %s2297_s3 = sld [smem:[#allocation34_spill]] }
  0x17   : > { %s1889_s14 = smov [#allocation10]   ;;  %p1283_p6 = scmp.ge.s32.totalorder %s1887_s26, 2 }
  0x18   : > { %p2007_p3 = pnand %p1276_p0, %p355_p2  ;;  %s368_s15 = sshll.u32 %s1889_s14, 4  ;;  %s369_s15 = int_to_ptr.vmem [resolvable:$true] %s368_s15 }
  0x19   : > { %s2300_s7 = sld [smem:[#allocation36_spill]]  ;;  %s2275_s20 = smov 64  }
  0x1a   : > { %p1390_p4 = pneg %p2007_p3  ;;  %s2276_s28 = smov 4  }
  0x1b   : > { %s1892_s29 = smov [#allocation13]   ;;  %s2301_s9 = sld [smem:[#allocation38_spill]] }
  0x1c   : > { %s366_s30 = sshll.u32 %s2297_s3, 4  ;;  %p2015_p5 = pnand %p1390_p4, %p69_p1  ;;  %s367_s30 = int_to_ptr.hbm [resolvable:$true] %s366_s30 }
  0x1d   : > { %s402_s14 = sshll.u32 %s1892_s29, 4  ;;  %s1275_s29 = sadd.s32 4294967294, %s1887_s26   ;;  %s403_s14 = int_to_ptr.vmem [resolvable:$true] %s402_s14 }
  0x1e   : > { %1393 = dma.hbm_to_vmem [thread:$0]  (!%p2015_p5), %s367_s30, 256, %s369_s15, [#allocation11], %s2275_s20, %s2275_s20, %s2276_s28  }
  0x1f   : > { %s400_s19 = sshll.u32 %s2300_s7, 4  ;;  %s1893_s30 = smov [#allocation16]   ;;  %s401_s19 = int_to_ptr.hbm [resolvable:$true] %s400_s19 }
  0x20   : > { %1399 = dma.hbm_to_vmem [thread:$0]  (!%p2015_p5), %s401_s19, 256, %s403_s14, [#allocation14], %s2275_s20, %s2275_s20, %s2276_s28  }
  0x21   : > { %s426_s3 = sshll.u32 %s2301_s9, 4  ;;  %s428_s15 = sshll.u32 %s1893_s30, 4  ;;  %s427_s3 = int_to_ptr.hbm [resolvable:$true] %s426_s3  ;;  %s429_s15 = int_to_ptr.vmem [resolvable:$true] %s428_s15 }
  0x22   : > { %1405 = dma.hbm_to_vmem [thread:$0]  (!%p2015_p5), %s427_s3, 256, %s429_s15, [#allocation17], %s2275_s20, %s2275_s20, %s2276_s28  }
  0x23   : > { %s46_s17 = sadd.s32 1, %s1883_s25  ;;  %s55_s18 = sadd.s32 1, %s1875_s23 }
  0x24   : > { %p48_p7 = scmp.ge.s32.totalorder %s46_s17, 2  ;;  %p62_p8 = scmp.ne.s32.totalorder %s1875_s23, %s1871_s22 }
  0x25   : > { %p63_p9 = scmp.eq.s32.totalorder %s1887_s26, 0  ;;  %p68_p10 = scmp.ne.s32.totalorder %s1871_s22, %s1867_s21 }
  0x26   : > { %s2330_s17 = smov (%p48_p7, %s46_s17), 0  ;;  %p342_p13 = scmp.eq.s32.totalorder %s1999_s27, 1 }
  0x27   : > { %2302 = sst [smem:[#allocation29_spill]] %s2330_s17  ;;  %p2051_p11 = por %p63_p9, %p62_p8 }
  0x28   : > { %p2057_p12 = por %p69_p1, %p68_p10  ;;  %s50_s14 = ssub.s32 %s1883_s25, %s2330_s17 }
  0x29   : > { %p53_p0 = scmp.eq.s32.totalorder %s50_s14, 0  ;;  %p348_p2 = scmp.eq.s32.totalorder %s1275_s29, 1 }
  0x2a   : > { %p2064_p4 = por %p342_p13, %p62_p8  ;;  %p1429_p7 = scmp.lt.s32.totalorder %s1887_s26, 2 }
  0x2b   : > { %s2070_s15 = scalar_select %p53_p0, %s1875_s23, %s55_s18  }
  0x2c   : > { %s2305_s30 = scalar_select %p2064_p4, 1, 0 }
  0x2d   : > { %2307 = sst [smem:[#allocation31_spill]] %s2070_s15  ;;  %p2072_p9 = por %p348_p2, %p68_p10 }
  0x2e   : > { %2306 = sst [smem:[#allocation30_spill]] %s2305_s30  ;;  %s2280_s28 = sand.u32 1, %s1875_s23  }
  0x2f   : > { %s2308_s20 = scalar_select %p2072_p9, 1, 0 }
  0x30   : > { %s2079_s7 = sshll.u32 %s2280_s28, 3  ;;  %s2082_s9 = sshll.u32 %s1883_s25, 3 }
  0x31   : > { %2309 = sst [smem:[#allocation32_spill]] %s2308_s20  ;;  %p2086_p8 = pnand %p1429_p7, %p2051_p11 }
  0x32   : > { %s474_s18 = sand.u32 1, %s1887_s26   ;;  %s2311_s1 = sld [smem:[#allocation33_spill]] }
  0x33   : > { %s478_s21 = scalar_lea.vmem [#allocation7], %s2079_s7  ;;  %s2096_s25 = scalar_lea.sflag [#allocation8], %s474_s18 }
  0x34   : > { %s486_s28 = sshll.u32 %s478_s21, 4  ;;  %s2312_s5 = sld [smem:[#allocation35_spill]]  ;;  %s487_s28 = int_to_ptr.vmem [resolvable:$true] %s486_s28 }
  0x35   : > { %s1894_s26 = smov [#allocation12]   ;;  %s2313_s8 = sld [smem:[#allocation37_spill]] }
  0x36   : > { %s385_s17 = sshll.u32 %s1894_s26, 4  ;;  %s2314_s18 = smov 4   ;;  %s386_s17 = int_to_ptr.vmem [resolvable:$true] %s385_s17 }
  0x37   : > { %s441_s26 = sshll.u32 %s2272_s10, 4  ;;  %s2316_s30 = sand.u32 1, %s1875_s23   ;;  %s442_s26 = int_to_ptr.hbm [resolvable:$true] %s441_s26 }
  0x38   : > { %s482_s15 = scalar_lea.hbm %s2311_s1, %s2082_s9  ;;  %s2315_s1 = smov 64  }
  0x39   : > { %s484_s20 = sshll.u32 %s482_s15, 4  ;;  %s1896_s15 = smov [#allocation18]   ;;  %s485_s20 = int_to_ptr.hbm [resolvable:$true] %s484_s20 }
  0x3a   : > { %1415 = dma.hbm_to_vmem [thread:$0]  (!%p2086_p8), %s485_s20, 128, %s487_s28, %s2096_s25  }
  0x3b   : > { %s383_s12 = sshll.u32 %s2312_s5, 4  ;;  %s415_s14 = sshll.u32 %s2313_s8, 4  ;;  %s384_s12 = int_to_ptr.hbm [resolvable:$true] %s383_s12  ;;  %s416_s14 = int_to_ptr.hbm [resolvable:$true] %s415_s14 }
  0x3c   : > { %1396 = dma.hbm_to_vmem [thread:$0]  (!%p2015_p5), %s384_s12, 256, %s386_s17, [#allocation11], %s2315_s1, %s2315_s1, %s2314_s18  }
  0x3d   : > { %s1895_s20 = smov [#allocation15]   ;;  %s443_s21 = sshll.u32 %s1896_s15, 4  ;;  %s444_s21 = int_to_ptr.vmem [resolvable:$true] %s443_s21 }
  0x3e   : > { %s417_s28 = sshll.u32 %s1895_s20, 4  ;;  %s463_s12 = scalar_lea.hbm %s2262_s0, %s2082_s9  ;;  %s418_s28 = int_to_ptr.vmem [resolvable:$true] %s417_s28 }
  0x3f   : > { %1402 = dma.hbm_to_vmem [thread:$0]  (!%p2015_p5), %s416_s14, 16, %s418_s28, [#allocation14]  }
  0x40   : > { %1408 = dma.hbm_to_vmem [thread:$0]  (!%p2015_p5), %s442_s26, 16, %s444_s21, [#allocation17]  }
  0x41   : > { %s465_s17 = sshll.u32 %s463_s12, 4  ;;  %s458_s18 = scalar_lea.vmem [#allocation4], %s2079_s7  ;;  %s466_s17 = int_to_ptr.hbm [resolvable:$true] %s465_s17 }
  0x42   : > { %s467_s20 = sshll.u32 %s458_s18, 4  ;;  %s455_s19 = scalar_lea.sflag [#allocation5], %s2316_s30  ;;  %s468_s20 = int_to_ptr.vmem [resolvable:$true] %s467_s20 }
  0x43   : > { %1412 = dma.hbm_to_vmem [thread:$0]  (!%p2086_p8), %s466_s17, 128, %s468_s20, %s455_s19  }
  0x44   : > { %s501_s15 = scalar_lea.hbm %s2264_s2, %s2082_s9  ;;  %s497_s5 = scalar_lea.vmem [#allocation9], %s2079_s7 }
  0x45   : > { %s503_s8 = sshll.u32 %s501_s15, 4  ;;  %s505_s1 = sshll.u32 %s497_s5, 4  ;;  %s504_s8 = int_to_ptr.hbm [resolvable:$true] %s503_s8  ;;  %s506_s1 = int_to_ptr.vmem [resolvable:$true] %s505_s1 }
  0x46   : > { %1418 = dma.hbm_to_vmem [thread:$0]  (!%p2086_p8), %s504_s8, 128, %s506_s1, %s2096_s25  }
  0x47   : > { %524 = sbr.rel (%p2007_p3) target bundleno = 1170 (0x492), region = 68  ;;  %s2139_s16 = sand.u32 (!%p2007_p3), 1, %s1871_s22  }
  0x48   : > { %s2142_s26 = sshll.u32 (!%p2007_p3), %s2139_s16, 3  ;;  %s527_s9 = scalar_lea.sflag (!%p2007_p3), [#allocation5], %s2139_s16 }
  0x49   : > { %s530_s21 = scalar_lea.vmem (!%p2007_p3), [#allocation4], %s2142_s26 }
  0x4c   : > { %1842 = dma.done.wait (%p2057_p12), %s527_s9, 128  }
  0x4d   : > { %1844 = vsyncadd (%p2057_p12), %s527_s9, 4294967168  ;;  %s536_s7 = sand.u32 1, %s1999_s27   ;;  %s540_s25 = scalar_lea.vmem [#allocation7], %s2142_s26 }
  0x4e   : > { %s537_s8 = scalar_lea.sflag [#allocation8], %s536_s7 }
  0x4f   : > { %1846 = dma.done.wait (%p2057_p12), %s537_s8, 256  }
  0x50   : > { %1848 = vsyncadd (%p2057_p12), %s537_s8, 4294967040  ;;  %s550_s13 = scalar_lea.vmem [#allocation9], %s2142_s26 }
  0x51   : > { %1850 = dma.done.wait (%p69_p1), [#allocation11], 512  }
  0x52   : > { %1852 = vsyncadd (%p69_p1), [#allocation11], 4294966784 }
  0x53   : > { %1854 = dma.done.wait (%p69_p1), [#allocation14], 272  }
  0x54   : > { %1856 = vsyncadd (%p69_p1), [#allocation14], 4294967024 }
  0x55   : > { %1858 = dma.done.wait (%p69_p1), [#allocation17], 272  }
  0x56   : > { %1860 = vsyncadd (%p69_p1), [#allocation17], 4294967024  ;;  %v1351_v0 = vld [vmem:[#allocation12 + $0x8] sm:$0xff]  ;;  %v1355_v1 = vld [vmem:[#allocation10 + $0x8] sm:$0xff]  ;;  %vm673_vm0 = vcmask 261120   ;;  %vm729_vm1 = vcmask 257024  }
  0x57   : > { %v1350_v2 = vld [vmem:[#allocation12] sm:$0xff]  ;;  %v1354_v3 = vld [vmem:[#allocation10] sm:$0xff]  ;;  %683 = vmatpush.bf16.msra.mxu0 %v1351_v0  ;;  %765 = vmatpush.bf16.msra.mxu2 %v1355_v1  ;;  %v1499_v8 = vld [vmem:[%s2268_s6] ss:$0 sm:$0xff]  ;;  %vm778_vm2 = vcmask 64512   ;;  %s1897_s17 = smov 112  }
  0x58   : > { %v651_v4 = vld [vmem:[%s540_s25] sm:$0xff]  ;;  %v733_v5 = vld [vmem:[%s530_s21] sm:$0xff]  ;;  %s1898_s18 = smov 120   ;;  %s1899_s20 = smov 104   ;;  %vm813_vm3 = vcmask 1043456   ;;  %vm1020_vm4 = vcmask 130048  }
  0x59   : > { %v652_v6 = vpack.c.bf16 %v651_v4, %v651_v4  ;;  %v734_v7 = vpack.c.bf16 %v733_v5, %v733_v5  ;;  %v1500_v12 = vld [vmem:[%s2266_s4] ss:$0 sm:$0xff]  ;;  %v1352_v26 = vld [vmem:[#allocation13] sm:$0xff]  ;;  %v690_v27 = vld [vmem:[%s550_s13] sm:$0xff]  ;;  %p639_p1 = scmp.lt.s32.totalorder %s1879_s24, 1  ;;  %s1900_s5 = smov 8  }
  0x5a   : > { %v1353_v25 = vld [vmem:[#allocation13 + $0x8] sm:$0xff]  ;;  %v691_v28 = vpack.c.bf16 %v690_v27, %v690_v27  ;;  %v1501_v44 = vld [vmem:[#allocation15] ss:$0 sm:$0xff]  ;;  %s1901_s1 = smov 24   ;;  %s1902_s9 = smov 16   ;;  %vm1022_vm5 = vcmask 195584  }
  0x5b   : > { %684 = vmatpush.bf16.msra.mxu0 %v1350_v2  ;;  %766 = vmatpush.bf16.msra.mxu2 %v1354_v3  ;;  %s640_s30 = scalar_select %p639_p1, %s1879_s24, 1 }
  0x5c   : > { %721 = vmatpush.bf16.msra.mxu1 %v1353_v25  ;;  %s1347_s21 = sshll.u32 %s1879_s24, 3  ;;  %s2317_s25 = sld [smem:[#allocation39_spill]] }
  0x5d   : > { %s1301_s19 = sshll.u32 %s640_s30, 2  ;;  %s638_s29 = scalar_lea.vmem [#allocation19], %s2142_s26 }
  0x5e   : > { %1310 = vmatmul.msk.bf16.vlgmr.msra.gmra.mxu0 %vm673_vm0, %v652_v6  ;;  %1328 = vmatmul.msk.bf16.vlgmr.msra.gmra.mxu2 %vm673_vm0, %v734_v7  ;;  %s645_s15 = scalar_lea.vmem %s2273_s11, %s1301_s19  ;;  %s1076_s12 = sshll.u32 %s638_s29, 4  ;;  %s1077_s12 = int_to_ptr.vmem [resolvable:$true] %s1076_s12 }
  0x5f   : > { %v776_v37 = vld [vmem:[%s645_s15] sm:$0xf] }
  0x60   : > { %722 = vmatpush.bf16.msra.mxu1 %v1352_v26  ;;  %v777_v38 = vunpack.c.l.bf16 %v776_v37 }
  0x62   : > { %s2318_s13 = smov %s2317_s25  ;;  %s1074_s27 = scalar_lea.hbm %s2317_s25, %s1347_s21 }
  0x63   : > { %1319 = vmatmul.msk.bf16.vlgmr.msra.gmra.mxu1 %vm673_vm0, %v691_v28  ;;  %s1809_s26 = scalar_lea.hbm %s2318_s13, 16 }
  0xdb   : > { %v686_v9 = vpop.f32.mrf.mxu0 }
  0xdc   : > { %v687_v10 = vadd.f32 %v1499_v8, %v686_v9 }
  0xde   : > { %v728_v11 = vpack.c.bf16 %v687_v10, %v687_v10 }
  0xe0   : > { %730 = vst.msk [vmem:[#allocation2] sm:$0xf] %vm729_vm1, %v728_v11  ;;  %v724_v45 = vpop.f32.mrf.mxu1 }
  0xe1   : > { %v768_v13 = vpop.f32.mrf.mxu2  ;;  %v725_v46 = vadd.f32 %v1501_v44, %v724_v45 }
  0xe2   : > { %v769_v14 = vadd.f32 %v1500_v12, %v768_v13 }
  0xe3   : > { %v688_v15 = vpop.f32.mrf.mxu0  ;;  %v731_v47 = vpack.c.bf16 %v725_v46, %v725_v46 }
  0xe4   : > { %v772_v16 = vmul.f32 0.35355338, %v769_v14 }
  0xe5   : > { %732 = vst.msk [vmem:[#allocation3] sm:$0xf] %vm729_vm1, %v731_v47 }
  0xe6   : > { %v773_v17 = vpack.c.bf16 %v772_v16, %v772_v16 }
  0xe7   : > { %v774_v18 = vld [vmem:[#allocation2] sm:$0xf] }
  0xe8   : > { %v831_v19 = vunpack.c.l.b16 %v773_v17  ;;  %v783_v20 = vsel %vm778_vm2, %v774_v18, 0  ;;  %v836_v21 = vunpack.c.l.b16 %v774_v18  ;;  %v726_v48 = vpop.f32.mrf.mxu1 }
  0xe9   : > { %v770_v22 = vpop.f32.mrf.mxu2  ;;  %792 = vmatpush.bf16.xpose.msra.mxu3 %v783_v20 }
  0xea   : > { %v837_v23 = vpack.c.b16 %v836_v21, %v836_v21  ;;  %v832_v24 = vpack.c.b16 %v831_v19, %v831_v19 }
  0xec   : > { %895 = vrot.lane.b32.xlu2 %v832_v24, %s1897_s17  ;;  %897 = vrot.lane.b32.xlu1 %v837_v23, %s1897_s17  ;;  %v775_v49 = vld [vmem:[#allocation3] sm:$0xf] }
  0xed   : > { %838 = vrot.lane.b32.xlu0 %v837_v23, %s1898_s18  ;;  %v815_v50 = vsel %vm813_vm3, %v775_v49, 0  ;;  %v872_v4 = vunpack.c.l.b16 %v775_v49 }
  0xee   : > { %824 = vmatpush.bf16.msrb.mxu0 %v815_v50 }
  0xef   : > { %v873_v5 = vpack.c.b16 %v872_v4, %v872_v4 }
  0xf0   : > { %1329 = vmatmul.msk.bf16.vlgmr.msra.gmra.mxu3 %vm778_vm2, %v773_v17 }
  0xf4   : > { %951 = vrot.lane.b32.xlu2 %v832_v24, %s1899_s20  ;;  %953 = vrot.lane.b32.xlu1 %v837_v23, %s1899_s20 }
  0xf5   : > { %833 = vrot.lane.b32.xlu0 %v832_v24, %s1898_s18 }
 0x146   : > { %v896_v33 = vpop.permute.xlu2 %895 }
 0x14e   : > { %v952_v42 = vpop.permute.xlu2 %951 }
 0x15e   : > { %v898_v29 = vpop.permute.xlu1 %897 }
 0x15f   : > { %v839_v30 = vpop.permute.xlu0 %838  ;;  %v903_v31 = vsel %vm778_vm2, %v898_v29, 0 }
 0x160   : > { %v844_v32 = vsel %vm778_vm2, %v839_v30, 0  ;;  %912 = vmatpush.bf16.xpose.msrb.mxu3 %v903_v31 }
 0x161   : > { %853 = vmatpush.bf16.xpose.msrb.mxu1 %v844_v32 }
 0x166   : > { %v954_v34 = vpop.permute.xlu1 %953 }
 0x167   : > { %v959_v35 = vsel %vm778_vm2, %v954_v34, 0  ;;  %v834_v36 = vpop.permute.xlu0 %833  ;;  %1333 = vmatmul.msk.bf16.vlgmr.msrb.gmra.mxu3 %vm778_vm2, %v896_v33 }
 0x168   : > { %1331 = vmatmul.msk.bf16.vlgmr.msrb.gmra.mxu1 %vm778_vm2, %v834_v36 }
 0x169   : > { %968 = vmatpush.bf16.xpose.msra.mxu1 %v959_v35 }
 0x173   : > { %v794_v39 = vpop.f32.mrf.mxu3 }
 0x174   : > { %v795_v40 = vadd.f32 %v794_v39, %v777_v38 }
 0x176   : > { %v798_v41 = vsel %vm778_vm2, %v795_v40, -inf }
 0x177   : > { %799 = vmax.xlane.f32.xlu1 %v798_v41 }
 0x178   : > { %1335 = vmatmul.msk.bf16.vlgmr.msra.gmra.mxu1 %vm778_vm2, %v952_v42 }
 0x17b   : > { %v796_v43 = vpop.f32.mrf.mxu3 }
 0x1e5   : > { %v855_v51 = vpop.f32.mrf.mxu1 }
 0x1e6   : > { %v856_v52 = vadd.f32 %v855_v51, %v777_v38  ;;  %v1357_v51 = vld [vmem:[#allocation16 + $0x8] sm:$0xff] }
 0x1e7   : > { %1054 = vmatpush.bf16.msra.mxu3 %v1357_v51 }
 0x1e8   : > { %v859_v53 = vsel %vm778_vm2, %v856_v52, -inf }
 0x1e9   : > { %860 = vmax.xlane.f32.xlu0 %v859_v53 }
 0x1ea   : > { %v914_v54 = vpop.f32.mrf.mxu3  ;;  %v800_v55 = vpop.xlane.xlu1 %799 }
 0x1eb   : > { %v801_v56 = vsub.f32 %v795_v40, %v800_v55  ;;  %v915_v1 = vadd.f32 %v914_v54, %v777_v38 }
 0x1ed   : > { %v802_v57 = vmul.f32 1.442695, %v801_v56  ;;  %v857_v58 = vpop.f32.mrf.mxu1  ;;  %v918_v3 = vsel %vm778_vm2, %v915_v1, -inf }
 0x1ef   : > { %1503 = vpow2.f32 %v802_v57 }
 0x1f2   : > { %v916_v59 = vpop.f32.mrf.mxu3 }
 0x1f5   : > { %v1504_v60 = vpop.eup %1503  ;;  %v970_v61 = vpop.f32.mrf.mxu1 }
 0x1f6   : > { %v971_v62 = vadd.f32 %v970_v61, %v777_v38  ;;  %v804_v63 = vsel %vm778_vm2, %v1504_v60, 0.0 }
 0x1f7   : > { %805 = vadd.xlane.f32.xlu1 %v804_v63 }
 0x1f8   : > { %v974_v0 = vsel %vm778_vm2, %v971_v62, -inf }
 0x1f9   : > { %975 = vmax.xlane.f32.xlu2 %v974_v0 }
 0x1fd   : > { %v972_v2 = vpop.f32.mrf.mxu1 }
 0x201   : > { %919 = vmax.xlane.f32.xlu2 %v918_v3 }
 0x219   : > { %874 = vrot.lane.b32.xlu2 %v873_v5, %s1898_s18  ;;  %s1063_s18 = scalar_lea.sflag [#allocation6], %s2139_s16 }
 0x25c   : > { %v861_v6 = vpop.xlane.xlu0 %860 }
 0x25d   : > { %v862_v7 = vsub.f32 %v856_v52, %v861_v6  ;;  %v1356_v52 = vld [vmem:[#allocation16] sm:$0xff] }
 0x25e   : > { %1055 = vmatpush.bf16.msra.mxu3 %v1356_v52 }
 0x25f   : > { %v863_v8 = vmul.f32 1.442695, %v862_v7 }
 0x261   : > { %1505 = vpow2.f32 %v863_v8 }
 0x267   : > { %v1506_v9 = vpop.eup %1505 }
 0x268   : > { %v865_v10 = vsel %vm778_vm2, %v1506_v9, 0.0 }
 0x269   : > { %866 = vadd.xlane.f32.xlu0 %v865_v10 }
 0x26a   : > { %v806_v11 = vpop.xlane.xlu1 %805 }
 0x26b   : > { %1507 = vrcp.f32 %v806_v11 }
 0x26c   : > { %v976_v12 = vpop.xlane.xlu2 %975 }
 0x26d   : > { %v977_v13 = vsub.f32 %v971_v62, %v976_v12 }
 0x26f   : > { %v978_v14 = vmul.f32 1.442695, %v977_v13 }
 0x271   : > { %v1508_v15 = vpop.eup %1507  ;;  %1509 = vpow2.f32 %v978_v14 }
 0x272   : > { %v808_v16 = vmul.f32 %v1508_v15, %v1504_v60  ;;  %v1502_v60 = vld [vmem:[#allocation18] ss:$0 sm:$0xff] }
 0x274   : > { %v920_v17 = vpop.xlane.xlu2 %919  ;;  %v809_v18 = vpack.c.bf16 %v808_v16, %v808_v16 }
 0x275   : > { %v921_v19 = vsub.f32 %v915_v1, %v920_v17 }
 0x276   : > { %1330 = vmatmul.msk.bf16.vlgmr.msrb.gmra.mxu0 %vm778_vm2, %v809_v18 }
 0x277   : > { %v1510_v20 = vpop.eup %1509  ;;  %v922_v21 = vmul.f32 1.442695, %v921_v19 }
 0x278   : > { %v980_v22 = vsel %vm778_vm2, %v1510_v20, 0.0 }
 0x279   : > { %1511 = vpow2.f32 %v922_v21  ;;  %981 = vadd.xlane.f32.xlu0 %v980_v22 }
 0x27c   : > { %v875_v23 = vpop.permute.xlu2 %874 }
 0x27d   : > { %v880_v24 = vsel %vm813_vm3, %v875_v23, 0 }
 0x27e   : > { %889 = vmatpush.bf16.msrb.mxu2 %v880_v24 }
 0x27f   : > { %v1512_v25 = vpop.eup %1511 }
 0x280   : > { %v924_v26 = vsel %vm778_vm2, %v1512_v25, 0.0 }
 0x281   : > { %925 = vadd.xlane.f32.xlu1 %v924_v26 }
 0x28d   : > { %986 = vrot.lane.b32.xlu0 %v873_v5, %s1899_s20 }
 0x29a   : > { %930 = vrot.lane.b32.xlu1 %v873_v5, %s1897_s17  ;;  %s1078_s17 = sshll.u32 %s1074_s27, 4  ;;  %s1079_s17 = int_to_ptr.hbm [resolvable:$true] %s1078_s17 }
 0x29b   : > { %s1803_s20 = sshra.s32 %s1079_s17, 4  ;;  %s1804_s20 = int_to_ptr.hbm [resolvable:$true] %s1803_s20 }
 0x29c   : > { %s1805_s30 = scalar_lea.hbm %s1804_s20, 8  ;;  %p1810_p11 = scmp.lt.s32.totalorder %s1804_s20, %s2318_s13 }
 0x29d   : > { %p1806_p3 = scmp.ne.s32.totalorder %s1804_s20, %s1805_s30  ;;  %p1811_p12 = scmp.lt.s32.totalorder %s1809_s26, %s1805_s30 }
 0x29f   : > { %p1807_p5 = pnand %p1806_p3, %p2064_p4  ;;  %p1812_p13 = por %p1811_p12, %p1810_p11 }
 0x2a1   : > { %p1808_p10 = pneg %p1807_p5 }
 0x2a3   : > { %p1813_p0 = pnand %p1812_p13, %p1808_p10 }
 0x2dc   : > { %v867_v27 = vpop.xlane.xlu0 %866 }
 0x2dd   : > { %1513 = vrcp.f32 %v867_v27 }
 0x2e3   : > { %v1514_v28 = vpop.eup %1513 }
 0x2e4   : > { %v869_v29 = vmul.f32 %v1514_v28, %v1506_v9 }
 0x2e6   : > { %v870_v30 = vpack.c.bf16 %v869_v29, %v869_v29 }
 0x2e8   : > { %1332 = vmatmul.msk.bf16.vlgmr.msrb.gmra.mxu2 %vm778_vm2, %v870_v30 }
 0x2ec   : > { %v982_v31 = vpop.xlane.xlu0 %981 }
 0x2ed   : > { %1515 = vrcp.f32 %v982_v31 }
 0x2f3   : > { %v826_v32 = vpop.f32.mrf.mxu0  ;;  %v1516_v33 = vpop.eup %1515 }
 0x2f4   : > { %v984_v35 = vmul.f32 %v1516_v33, %v1510_v20  ;;  %v926_v36 = vpop.xlane.xlu1 %925 }
 0x2f5   : > { %1517 = vrcp.f32 %v926_v36 }
 0x2f6   : > { %v985_v39 = vpack.c.bf16 %v984_v35, %v984_v35 }
 0x2fb   : > { %v828_v34 = vpop.f32.mrf.mxu0  ;;  %v1518_v40 = vpop.eup %1517 }
 0x2fc   : > { %v928_v41 = vmul.f32 %v1518_v40, %v1512_v25 }
 0x2fe   : > { %v929_v44 = vpack.c.bf16 %v928_v41, %v928_v41 }
 0x2ff   : > { %v987_v37 = vpop.permute.xlu0 %986 }
 0x300   : > { %v992_v38 = vsel %vm813_vm3, %v987_v37, 0 }
 0x301   : > { %1001 = vmatpush.bf16.msra.mxu2 %v992_v38 }
 0x304   : > { %1336 = vmatmul.msk.bf16.vlgmr.msra.gmra.mxu2 %vm778_vm2, %v985_v39 }
 0x30c   : > { %v931_v42 = vpop.permute.xlu1 %930 }
 0x30d   : > { %v936_v43 = vsel %vm813_vm3, %v931_v42, 0 }
 0x30e   : > { %945 = vmatpush.bf16.msra.mxu0 %v936_v43 }
 0x311   : > { %1334 = vmatmul.msk.bf16.vlgmr.msra.gmra.mxu0 %vm778_vm2, %v929_v44 }
 0x36b   : > { %v891_v45 = vpop.f32.mrf.mxu2 }
 0x36c   : > { %1008 = vrot.lane.b32.xlu2 %v891_v45, %s1900_s5 }
 0x373   : > { %v893_v46 = vpop.f32.mrf.mxu2 }
 0x387   : > { %v1003_v47 = vpop.f32.mrf.mxu2 }
 0x388   : > { %1016 = vrot.lane.b32.xlu2 %v1003_v47, %s1901_s1 }
 0x38e   : > { %v947_v48 = vpop.f32.mrf.mxu0 }
 0x38f   : > { %v1005_v49 = vpop.f32.mrf.mxu2  ;;  %1012 = vrot.lane.b32.xlu0 %v947_v48, %s1902_s9 }
 0x396   : > { %v949_v50 = vpop.f32.mrf.mxu0 }
 0x3c6   : > { %v1009_v53 = vpop.permute.xlu2 %1008 }
 0x3c7   : > { %v1019_v54 = vsel %vm778_vm2, %v826_v32, %v1009_v53 }
 0x3e2   : > { %v1017_v56 = vpop.permute.xlu2 %1016 }
 0x401   : > { %v1013_v55 = vpop.permute.xlu0 %1012 }
 0x402   : > { %v1021_v57 = vsel %vm1020_vm4, %v1019_v54, %v1013_v55 }
 0x403   : > { %v1023_v58 = vsel %vm1022_vm5, %v1021_v57, %v1017_v56 }
 0x404   : > { %v1024_v59 = vpack.c.bf16 %v1023_v58, %v1023_v58 }
 0x406   : > { %1345 = vmatmul.msk.bf16.vlgmr.msra.gmra.mxu3 %vm673_vm0, %v1024_v59 }
 0x489   : > { %v1057_v61 = vpop.f32.mrf.mxu3 }
 0x48a   : > { %v1058_v62 = vadd.f32 %v1502_v60, %v1057_v61 }
 0x48c   : > { %1061 = vst.msk [vmem:[%s638_s29] sm:$0xff] %vm673_vm0, %v1058_v62 }
 0x48d   : > { %1816 = shalt.err (!%p1813_p0)
}
 0x48e   : > { %1388 = dma.vmem_to_hbm [thread:$0]  (%p2064_p4), %s1077_s12, 128, %s1079_s17, %s1063_s18  }
 0x491   : > { %v1059_v63 = vpop.f32.mrf.mxu3 }
 0x492 PF: > { %s2320_s16 = sld [smem:[#allocation26_spill]]  ;;  %p1420_p2 = pnand %p1283_p6, %p2072_p9 }
 0x493   : > { %s2322_s5 = sld [smem:[#allocation28_spill]] }
 0x494   : > { %p1421_p7 = pneg %p1420_p2 }
 0x498   : > { %s1090_s1 = sand.u32 1, %s2320_s16  }
 0x499   : > { %s1091_s9 = scalar_lea.sflag [#allocation6], %s1090_s1 }
 0x49a   : > { %1862 = dma.done.wait (%p1421_p7), %s1091_s9, 128  }
 0x49b   : > { %1864 = vsyncadd (%p1421_p7), %s1091_s9, 4294967168  ;;  %s34_s26 = sadd.s32 1, %s2322_s5   ;;  %s2323_s7 = sld [smem:[#allocation31_spill]] }
 0x49c   : > { %p31_p8 = scmp.ge.s32.totalorder %s34_s26, 4   ;;  %s2324_s24 = sld [smem:[#allocation27_spill]] }
 0x49d   : > { %s2325_s25 = sld [smem:[#allocation29_spill]]  ;;  %s2326_s21 = smov %s1871_s22 }
 0x49e   : > { %s2327_s22 = smov %s1875_s23  ;;  %33 = sbr.rel (!%p31_p8) target bundleno = 19 (0x13), region = 168 }
 0x4a1   : > { %s2328_s23 = smov %s2323_s7 }
 0x4a3   :  { %1097 = vsyncpa [#allocation5], 1 }
 0x4a4   :  { %1099 = vsyncpa [#allocation5 + $0x1], 1 }
 0x4a5   :  { %1100 = vsyncpa [#allocation8], 1 }
 0x4a6   :  { %1102 = vsyncpa [#allocation8 + $0x1], 1 }
 0x4a7   :  { %1103 = vsyncpa [#allocation11], 1 }
 0x4a8   :  { %1104 = vsyncpa [#allocation14], 1 }
 0x4a9   :  { %1105 = vsyncpa [#allocation17], 1 }
 0x4aa   :  { %1106 = vsyncpa [#allocation6], 1 }
 0x4ab   :  { %1108 = vsyncpa [#allocation6 + $0x1], 1 }

</bundles_post_ra>
